<compile_context>
chip_gen: v7x
topology: tpu7x:2x2x1
jax: 0.10.0
libtpu: 0.0.40
codegen_flags: <defaults>
</compile_context>

<pallas_src>
import jax
import jax.numpy as jnp
import numpy as np
from jax.experimental import pallas as pl
from jax.experimental.pallas import tpu as pltpu

_LANE = 128


def _lpm_kernel(x0_ref, x1_ref, x2_ref, x3_ref,
                w0_ref, w1_ref, w2_ref, w3_ref, bias_ref,
                out_ref):
    """Folded loss-prediction head.

    x_ref : (tb, rows_i, 128) contiguous reshape of the NCHW activation block.
    w_ref : (rows_i, 128) folded weight slab, laid out in the same flattened
            NCHW order (mean-pool scale folded in).
    bias  : (1, 1) folded bias = sum_i b_i @ wf_i + bf.
    out   : (tb, 1)
    """
    def scale_contrib(x_ref, w_ref):
        x = x_ref[...]                                    # (tb, rows, 128)
        s = jnp.sum(x * w_ref[...][None, :, :], axis=1)   # sublane reduce -> (tb, 128)
        return jnp.sum(s, axis=-1, keepdims=True)         # lane reduce    -> (tb, 1)

    acc = scale_contrib(x0_ref, w0_ref)
    acc = acc + scale_contrib(x1_ref, w1_ref)
    acc = acc + scale_contrib(x2_ref, w2_ref)
    acc = acc + scale_contrib(x3_ref, w3_ref)
    # (tb, 1) store is masked/narrow but negligible next to ~120 KiB/sample of
    # streamed activations.
    out_ref[...] = acc + bias_ref[...]


def _fold_weights(params, shapes):
    """Fold fc1..fc4 + concat + final into per-position NCHW-order slabs + bias."""
    slabs = []
    bias_total = params["bf"].reshape(1, 1).astype(jnp.float32)
    for i, name in enumerate(["1", "2", "3", "4"]):
        c, h, w = shapes[i]
        hw = h * w
        wf_i = params["wf"][128 * i:128 * (i + 1), :].astype(jnp.float32)   # (128, 1)
        v_i = (params[f"w{name}"].astype(jnp.float32) @ wf_i)[:, 0]         # (C_i,)
        u_i = v_i / float(hw)                                               # mean folded in
        slab = jnp.repeat(u_i, hw)                                          # (C_i*H*W,), NCHW order
        n = c * hw
        rows = -(-n // _LANE)
        if rows * _LANE != n:                                               # non-standard shapes only
            slab = jnp.pad(slab, (0, rows * _LANE - n))
        slabs.append(slab.reshape(rows, _LANE))
        bias_total = bias_total + params[f"b{name}"].astype(jnp.float32) @ wf_i
    return slabs, bias_total


def loss_prediction_module(xs, params, *, vmem_budget_bytes=None):
    """xs: list of 4 NCHW feature maps with channels (64, 128, 256, 512)."""
    assert len(xs) == 4
    B = xs[0].shape[0]
    shapes = [tuple(x.shape[1:]) for x in xs]
    ceil_div = lambda a, b: -(-a // b)

    # --- free contiguous NCHW reshape to (B, rows_i, 128): no transpose ------
    xs_flat = []
    per_sample_bytes = 0
    for x in xs:
        b, c, h, w = x.shape
        n = c * h * w
        rows = ceil_div(n, _LANE)
        xf = x.reshape(b, n).astype(jnp.float32)
        if rows * _LANE != n:
            # Only hit for non-standard shapes; the 64/128/256/512-channel maps
            # are exactly divisible by 128, so no pad (and no extra HBM pass).
            xf = jnp.pad(xf, ((0, 0), (0, rows * _LANE - n)))
        xs_flat.append(xf.reshape(b, rows, _LANE))
        per_sample_bytes += ceil_div(rows, 8) * 8 * _LANE * 4

    slabs, bias_total = _fold_weights(params, shapes)
    weight_bytes = sum(ceil_div(s.shape[0], 8) * 8 * _LANE * 4 for s in slabs) + _LANE * 4

    # --- per-generation double-buffered activation budget --------------------
    if vmem_budget_bytes is None:
        kind = ""
        try:
            kind = jax.devices()[0].device_kind.lower()
        except Exception:
            pass
        if "v5" in kind:
            vmem_budget_bytes = 10 * 2**20   # stay under v5e's 16 MiB scoped default
        elif "v6" in kind:
            vmem_budget_bytes = 24 * 2**20
        elif "v7" in kind:
            vmem_budget_bytes = 32 * 2**20
        else:
            vmem_budget_bytes = 12 * 2**20

    # --- batch tile: no activation padding; ragged tail handled by masking ---
    tb_cap = max(1, int(vmem_budget_bytes // (2 * per_sample_bytes)))
    if B <= 8:
        tb = B                                       # single block; block dims == array dims
    else:
        tb = min(tb_cap, B)
        tb = max(8, (tb // 8) * 8)                   # keep (tb, 1) out-block 8-aligned
        # ensure >= 2 grid steps so v7x's second TensorCore has work
        tb = min(tb, ceil_div(ceil_div(B, 2), 8) * 8)
        n_blocks = ceil_div(B, tb)
        tb = ceil_div(ceil_div(B, n_blocks), 8) * 8  # re-balance block sizes
    grid = (pl.cdiv(B, tb),)

    # --- explicit scoped-VMEM limit: 2x inputs + 2x weights + 2x output + slack
    out_bytes = ceil_div(tb, 8) * 8 * _LANE * 4
    vmem_limit = int(2 * tb * per_sample_bytes + 2 * weight_bytes + 2 * out_bytes
                     + (4 << 20))
    vmem_limit = max(16 * 2**20, min(vmem_limit, 64 * 2**20))

    x_specs = [pl.BlockSpec((tb,) + tuple(x.shape[1:]), lambda i: (i, 0, 0))
               for x in xs_flat]
    w_specs = [pl.BlockSpec(tuple(s.shape), lambda i: (0, 0)) for s in slabs]  # resident
    bias_spec = pl.BlockSpec((1, 1), lambda i: (0, 0))                         # resident
    out_spec = pl.BlockSpec((tb, 1), lambda i: (i, 0))

    out = pl.pallas_call(
        _lpm_kernel,
        out_shape=jax.ShapeDtypeStruct((B, 1), jnp.float32),
        grid=grid,
        in_specs=x_specs + w_specs + [bias_spec],
        out_specs=out_spec,
        compiler_params=pltpu.CompilerParams(
            dimension_semantics=("parallel",),
            vmem_limit_bytes=vmem_limit),
    )(*xs_flat, *slabs, bias_total)
    return out


def init_params(key):
    """PyTorch nn.Linear-style U(-1/sqrt(fan_in), +1/sqrt(fan_in)) init.

    Weights are stored already transposed: (in_features, out_features)."""
    sizes = {
        "1": (64, 128),
        "2": (128, 128),
        "3": (256, 128),
        "4": (512, 128),
        "f": (512, 1),
    }
    params = {}
    for name, (fan_in, fan_out) in sizes.items():
        key, kw, kb = jax.random.split(key, 3)
        bound = 1.0 / np.sqrt(fan_in)
        params[f"w{name}"] = jax.random.uniform(
            kw, (fan_in, fan_out), jnp.float32, -bound, bound)
        params[f"b{name}"] = jax.random.uniform(
            kb, (1, fan_out), jnp.float32, -bound, bound)
    return params


def reference_forward(xs, params):
    """Pure-JAX reference matching the PyTorch semantics (unfolded weights)."""
    ys = []
    for i, name in enumerate(["1", "2", "3", "4"]):
        p = jnp.mean(xs[i], axis=(2, 3))                    # adaptive avg-pool -> (B, C)
        ys.append(p @ params[f"w{name}"] + params[f"b{name}"])
    cat = jnp.concatenate(ys, axis=1)                       # (B, 512)
    return cat @ params["wf"] + params["bf"]                # (B, 1)


def _make_inputs(key, B):
    k0, k1, k2, k3 = jax.random.split(key, 4)
    return [
        jax.random.normal(k0, (B, 64, 16, 16), jnp.float32),
        jax.random.normal(k1, (B, 128, 8, 8), jnp.float32),
        jax.random.normal(k2, (B, 256, 4, 4), jnp.float32),
        jax.random.normal(k3, (B, 512, 2, 2), jnp.float32),
    ]


if __name__ == "__main__":
    params = init_params(jax.random.PRNGKey(42))

    key = jax.random.PRNGKey(0)
    key, k_small, k_big = jax.random.split(key, 3)

    # Small case (single block, B=2).
    xs = _make_inputs(k_small, 2)
    out = jax.block_until_ready(loss_prediction_module(xs, params))
    ref = jax.block_until_ready(reference_forward(xs, params))
    np.testing.assert_allclose(np.asarray(out), np.asarray(ref),
                               rtol=1e-4, atol=2e-5)
    assert out.shape == (2, 1)

    # Larger case exercising the multi-block path with a ragged tail (no pad).
    xs_big = _make_inputs(k_big, 40)
    out_big = jax.block_until_ready(loss_prediction_module(xs_big, params))
    ref_big = jax.block_until_ready(reference_forward(xs_big, params))
    np.testing.assert_allclose(np.asarray(out_big), np.asarray(ref_big),
                               rtol=1e-4, atol=2e-5)
    assert out_big.shape == (40, 1)

    print("KERNEL_OK")
</pallas_src>

<mosaic_0001>
module attributes {stable_mosaic.version = 11 : i64} {
  func.func @_lpm_kernel(%arg0: i32, %arg1: memref<2x128x128xf32, #tpu.memory_space<vmem>>, %arg2: memref<2x64x128xf32, #tpu.memory_space<vmem>>, %arg3: memref<2x32x128xf32, #tpu.memory_space<vmem>>, %arg4: memref<2x16x128xf32, #tpu.memory_space<vmem>>, %arg5: memref<128x128xf32, #tpu.memory_space<vmem>>, %arg6: memref<64x128xf32, #tpu.memory_space<vmem>>, %arg7: memref<32x128xf32, #tpu.memory_space<vmem>>, %arg8: memref<16x128xf32, #tpu.memory_space<vmem>>, %arg9: memref<1x1xf32, #tpu.memory_space<vmem>>, %arg10: memref<2x1xf32, #tpu.memory_space<vmem>>) attributes {dimension_semantics = [#tpu.dimension_semantics<parallel>], iteration_bounds = array<i64: 1>, scalar_prefetch = 0 : i64, scratch_operands = 0 : i64, tpu.core_type = #tpu.core_type<tc>, window_params = [{transform_indices = @transform_0, window_bounds = array<i64: 2, 128, 128>}, {transform_indices = @transform_1, window_bounds = array<i64: 2, 64, 128>}, {transform_indices = @transform_2, window_bounds = array<i64: 2, 32, 128>}, {transform_indices = @transform_3, window_bounds = array<i64: 2, 16, 128>}, {pipeline_mode = #tpu.pipeline_mode<synchronous>, transform_indices = @transform_4, window_bounds = array<i64: 128, 128>}, {pipeline_mode = #tpu.pipeline_mode<synchronous>, transform_indices = @transform_5, window_bounds = array<i64: 64, 128>}, {pipeline_mode = #tpu.pipeline_mode<synchronous>, transform_indices = @transform_6, window_bounds = array<i64: 32, 128>}, {pipeline_mode = #tpu.pipeline_mode<synchronous>, transform_indices = @transform_7, window_bounds = array<i64: 16, 128>}, {pipeline_mode = #tpu.pipeline_mode<synchronous>, transform_indices = @transform_8, window_bounds = array<i64: 1, 1>}, {transform_indices = @transform_9, window_bounds = array<i64: 2, 1>}]} {
    %c0 = arith.constant 0 : index
    %c0_0 = arith.constant 0 : index
    %c0_1 = arith.constant 0 : index
    %0 = vector.load %arg1[%c0, %c0_0, %c0_1] : memref<2x128x128xf32, #tpu.memory_space<vmem>>, vector<2x128x128xf32>
    %c0_2 = arith.constant 0 : index
    %c0_3 = arith.constant 0 : index
    %1 = vector.load %arg5[%c0_2, %c0_3] : memref<128x128xf32, #tpu.memory_space<vmem>>, vector<128x128xf32>
    %2 = vector.shape_cast %1 : vector<128x128xf32> to vector<1x128x128xf32>
    %3 = vector.broadcast %2 : vector<1x128x128xf32> to vector<2x128x128xf32>
    %4 = arith.mulf %0, %3 : vector<2x128x128xf32>
    %cst = arith.constant dense<0.000000e+00> : vector<2x128xf32>
    %5 = vector.multi_reduction <add>, %4, %cst [1] : vector<2x128x128xf32> to vector<2x128xf32>
    %cst_4 = arith.constant dense<0.000000e+00> : vector<2xf32>
    %6 = vector.multi_reduction <add>, %5, %cst_4 [1] : vector<2x128xf32> to vector<2xf32>
    %7 = vector.shape_cast %6 : vector<2xf32> to vector<2x1xf32>
    %c0_5 = arith.constant 0 : index
    %c0_6 = arith.constant 0 : index
    %c0_7 = arith.constant 0 : index
    %8 = vector.load %arg2[%c0_5, %c0_6, %c0_7] : memref<2x64x128xf32, #tpu.memory_space<vmem>>, vector<2x64x128xf32>
    %c0_8 = arith.constant 0 : index
    %c0_9 = arith.constant 0 : index
    %9 = vector.load %arg6[%c0_8, %c0_9] : memref<64x128xf32, #tpu.memory_space<vmem>>, vector<64x128xf32>
    %10 = vector.shape_cast %9 : vector<64x128xf32> to vector<1x64x128xf32>
    %11 = vector.broadcast %10 : vector<1x64x128xf32> to vector<2x64x128xf32>
    %12 = arith.mulf %8, %11 : vector<2x64x128xf32>
    %cst_10 = arith.constant dense<0.000000e+00> : vector<2x128xf32>
    %13 = vector.multi_reduction <add>, %12, %cst_10 [1] : vector<2x64x128xf32> to vector<2x128xf32>
    %cst_11 = arith.constant dense<0.000000e+00> : vector<2xf32>
    %14 = vector.multi_reduction <add>, %13, %cst_11 [1] : vector<2x128xf32> to vector<2xf32>
    %15 = vector.shape_cast %14 : vector<2xf32> to vector<2x1xf32>
    %16 = arith.addf %7, %15 : vector<2x1xf32>
    %c0_12 = arith.constant 0 : index
    %c0_13 = arith.constant 0 : index
    %c0_14 = arith.constant 0 : index
    %17 = vector.load %arg3[%c0_12, %c0_13, %c0_14] : memref<2x32x128xf32, #tpu.memory_space<vmem>>, vector<2x32x128xf32>
    %c0_15 = arith.constant 0 : index
    %c0_16 = arith.constant 0 : index
    %18 = vector.load %arg7[%c0_15, %c0_16] : memref<32x128xf32, #tpu.memory_space<vmem>>, vector<32x128xf32>
    %19 = vector.shape_cast %18 : vector<32x128xf32> to vector<1x32x128xf32>
    %20 = vector.broadcast %19 : vector<1x32x128xf32> to vector<2x32x128xf32>
    %21 = arith.mulf %17, %20 : vector<2x32x128xf32>
    %cst_17 = arith.constant dense<0.000000e+00> : vector<2x128xf32>
    %22 = vector.multi_reduction <add>, %21, %cst_17 [1] : vector<2x32x128xf32> to vector<2x128xf32>
    %cst_18 = arith.constant dense<0.000000e+00> : vector<2xf32>
    %23 = vector.multi_reduction <add>, %22, %cst_18 [1] : vector<2x128xf32> to vector<2xf32>
    %24 = vector.shape_cast %23 : vector<2xf32> to vector<2x1xf32>
    %25 = arith.addf %16, %24 : vector<2x1xf32>
    %c0_19 = arith.constant 0 : index
    %c0_20 = arith.constant 0 : index
    %c0_21 = arith.constant 0 : index
    %26 = vector.load %arg4[%c0_19, %c0_20, %c0_21] : memref<2x16x128xf32, #tpu.memory_space<vmem>>, vector<2x16x128xf32>
    %c0_22 = arith.constant 0 : index
    %c0_23 = arith.constant 0 : index
    %27 = vector.load %arg8[%c0_22, %c0_23] : memref<16x128xf32, #tpu.memory_space<vmem>>, vector<16x128xf32>
    %28 = vector.shape_cast %27 : vector<16x128xf32> to vector<1x16x128xf32>
    %29 = vector.broadcast %28 : vector<1x16x128xf32> to vector<2x16x128xf32>
    %30 = arith.mulf %26, %29 : vector<2x16x128xf32>
    %cst_24 = arith.constant dense<0.000000e+00> : vector<2x128xf32>
    %31 = vector.multi_reduction <add>, %30, %cst_24 [1] : vector<2x16x128xf32> to vector<2x128xf32>
    %cst_25 = arith.constant dense<0.000000e+00> : vector<2xf32>
    %32 = vector.multi_reduction <add>, %31, %cst_25 [1] : vector<2x128xf32> to vector<2xf32>
    %33 = vector.shape_cast %32 : vector<2xf32> to vector<2x1xf32>
    %34 = arith.addf %25, %33 : vector<2x1xf32>
    %c0_26 = arith.constant 0 : index
    %c0_27 = arith.constant 0 : index
    %35 = vector.load %arg9[%c0_26, %c0_27] : memref<1x1xf32, #tpu.memory_space<vmem>>, vector<1x1xf32>
    %36 = vector.broadcast %35 : vector<1x1xf32> to vector<2x1xf32>
    %37 = arith.addf %34, %36 : vector<2x1xf32>
    %c0_28 = arith.constant 0 : index
    %c0_29 = arith.constant 0 : index
    %38 = vector.load %arg10[%c0_28, %c0_29] : memref<2x1xf32, #tpu.memory_space<vmem>>, vector<2x1xf32>
    tpu.vector_store %arg10[%c0_28, %c0_29], %37 {strides = array<i32>} : memref<2x1xf32, #tpu.memory_space<vmem>>, vector<2x1xf32>,
    return
  }
  func.func @transform_0(%arg0: i32) -> (i32, i32, i32) {
    %c0_i32 = arith.constant 0 : i32
    %c0_i32_0 = arith.constant 0 : i32
    %c0_i32_1 = arith.constant 0 : i32
    return %arg0, %c0_i32, %c0_i32_0 : i32, i32, i32
  }
  func.func @transform_1(%arg0: i32) -> (i32, i32, i32) {
    %c0_i32 = arith.constant 0 : i32
    %c0_i32_0 = arith.constant 0 : i32
    %c0_i32_1 = arith.constant 0 : i32
    return %arg0, %c0_i32, %c0_i32_0 : i32, i32, i32
  }
  func.func @transform_2(%arg0: i32) -> (i32, i32, i32) {
    %c0_i32 = arith.constant 0 : i32
    %c0_i32_0 = arith.constant 0 : i32
    %c0_i32_1 = arith.constant 0 : i32
    return %arg0, %c0_i32, %c0_i32_0 : i32, i32, i32
  }
  func.func @transform_3(%arg0: i32) -> (i32, i32, i32) {
    %c0_i32 = arith.constant 0 : i32
    %c0_i32_0 = arith.constant 0 : i32
    %c0_i32_1 = arith.constant 0 : i32
    return %arg0, %c0_i32, %c0_i32_0 : i32, i32, i32
  }
  func.func @transform_4(%arg0: i32) -> (i32, i32) {
    %c0_i32 = arith.constant 0 : i32
    %c0_i32_0 = arith.constant 0 : i32
    %c0_i32_1 = arith.constant 0 : i32
    return %c0_i32, %c0_i32_0 : i32, i32
  }
  func.func @transform_5(%arg0: i32) -> (i32, i32) {
    %c0_i32 = arith.constant 0 : i32
    %c0_i32_0 = arith.constant 0 : i32
    %c0_i32_1 = arith.constant 0 : i32
    return %c0_i32, %c0_i32_0 : i32, i32
  }
  func.func @transform_6(%arg0: i32) -> (i32, i32) {
    %c0_i32 = arith.constant 0 : i32
    %c0_i32_0 = arith.constant 0 : i32
    %c0_i32_1 = arith.constant 0 : i32
    return %c0_i32, %c0_i32_0 : i32, i32
  }
  func.func @transform_7(%arg0: i32) -> (i32, i32) {
    %c0_i32 = arith.constant 0 : i32
    %c0_i32_0 = arith.constant 0 : i32
    %c0_i32_1 = arith.constant 0 : i32
    return %c0_i32, %c0_i32_0 : i32, i32
  }
  func.func @transform_8(%arg0: i32) -> (i32, i32) {
    %c0_i32 = arith.constant 0 : i32
    %c0_i32_0 = arith.constant 0 : i32
    %c0_i32_1 = arith.constant 0 : i32
    return %c0_i32, %c0_i32_0 : i32, i32
  }
  func.func @transform_9(%arg0: i32) -> (i32, i32) {
    %c0_i32 = arith.constant 0 : i32
    %c0_i32_0 = arith.constant 0 : i32
    return %arg0, %c0_i32 : i32, i32
  }
}

</mosaic_0001>

<bundles_post_ra>
// kernel: tpu_custom_call.1
= control target key start
LH: loop header
LB: loop body
LE: loop exit
PB: predicated region body
PF: predicated region fallthrough
CT: control target
= control target key end

     0   :  { %s904_s0 = inlined_call_operand.hbm [shape: f32[2,128,128], index: 0, kind: input, shape index: {}]   ;;  %s905_s1 = inlined_call_operand.hbm [shape: f32[2,64,128], index: 1, kind: input, shape index: {}]   ;;  %s906_s2 = inlined_call_operand.hbm [shape: f32[2,32,128], index: 2, kind: input, shape index: {}]   ;;  %s907_s3 = inlined_call_operand.hbm [shape: f32[2,16,128], index: 3, kind: input, shape index: {}]   ;;  %s908_s4 = inlined_call_operand.hbm [shape: f32[128,128], index: 4, kind: input, shape index: {}]   ;;  %s909_s5 = inlined_call_operand.hbm [shape: f32[64,128], index: 5, kind: input, shape index: {}]   ;;  %s910_s6 = inlined_call_operand.hbm [shape: f32[32,128], index: 6, kind: input, shape index: {}]   ;;  %s911_s7 = inlined_call_operand.vmem [shape: f32[16,128], index: 7, kind: input, shape index: {}]   ;;  %s912_s8 = inlined_call_operand.<no memory space> [shape: f32[1,1], index: 8, kind: input, shape index: {}]   ;;  %s913_s9 = inlined_call_operand.vmem [shape: f32[2,1], index: 9, kind: output, shape index: {}]  }
   0x1   :  { %v14_v0 = vstv %s912_s8 }
   0x2   :  { %15 = vst [vmem:[#allocation2] sm:$0x1] %v14_v0 }
   0x3   :  { %16 = vsyncpa [#allocation4], 0 }
   0x4   :  { %17 = vsyncpa [#allocation6], 0 }
   0x5   :  { %18 = vsyncpa [#allocation9], 0 }
   0x6   :  { %19 = vsyncpa [#allocation12], 0  ;;  %s602_s11 = smov [#allocation5]   ;;  %s603_s13 = smov [#allocation8]  }
   0x7   :  { %s37_s12 = sshll.u32 %s602_s11, 4  ;;  %s61_s14 = sshll.u32 %s603_s13, 4  ;;  %s38_s12 = int_to_ptr.vmem [resolvable:$true] %s37_s12  ;;  %s664_s14 = int_to_ptr.vmem [resolvable:$true] %s61_s14 }
   0x8   :  { %s440_s17 = scalar_lea.hbm %s905_s1, 2048 }
   0x9   :  { %p441_p0 = scmp.ne.s32.totalorder %s905_s1, %s440_s17  ;;  %p444_p1 = scmp.lt.u32.totalorder %s440_s17, %s905_s1 }
   0xb   :  { %p446_p2 = pnand %p444_p1, %p441_p0 }
   0xd   :  { %449 = shalt.err (!%p446_p2)
}
   0xe   :  { %s450_s21 = scalar_lea.vmem %s38_s12, 2048  ;;  %p455_p4 = scmp.lt.s32.totalorder %s38_s12, %s38_s12 }
   0xf   :  { %p451_p3 = scmp.ne.s32.totalorder %s38_s12, %s450_s21  ;;  %p456_p5 = scmp.lt.s32.totalorder %s450_s21, %s450_s21 }
  0x11   :  { %p457_p6 = por %p456_p5, %p455_p4 }
  0x13   :  { %p458_p7 = pnand %p457_p6, %p451_p3 }
  0x15   :  { %461 = shalt.err (!%p458_p7)
}
  0x16   :  { %s604_s22 = smov 128   ;;  %s605_s23 = smov 8  }
  0x17   :  { %43 = dma.hbm_to_vmem [thread:$0]  %s905_s1, 2048, %s38_s12, [#allocation6], %s604_s22, %s604_s22, %s605_s23  }
  0x18   :  { %s462_s28 = scalar_lea.hbm %s907_s3, 512 }
  0x19   :  { %p463_p8 = scmp.ne.s32.totalorder %s907_s3, %s462_s28  ;;  %p466_p9 = scmp.lt.u32.totalorder %s462_s28, %s907_s3 }
  0x1b   :  { %p468_p10 = pnand %p466_p9, %p463_p8 }
  0x1d   :  { %471 = shalt.err (!%p468_p10)
}
  0x1e   :  { %s472_s13 = scalar_lea.vmem %s664_s14, 512  ;;  %p477_p12 = scmp.lt.s32.totalorder %s664_s14, %s664_s14 }
  0x1f   :  { %p473_p11 = scmp.ne.s32.totalorder %s664_s14, %s472_s13  ;;  %p478_p13 = scmp.lt.s32.totalorder %s472_s13, %s472_s13 }
  0x21   :  { %p479_p0 = por %p478_p13, %p477_p12 }
  0x23   :  { %p480_p1 = pnand %p479_p0, %p473_p11 }
  0x25   :  { %483 = shalt.err (!%p480_p1)
}
  0x26   :  { %67 = dma.hbm_to_vmem [thread:$0]  %s907_s3, 512, %s664_s14, [#allocation9], %s604_s22, %s604_s22, %s605_s23  }
  0x27   :  { %s606_s15 = smov [#allocation11]   ;;  %s607_s17 = smov [#allocation3]  }
  0x28   :  { %s85_s16 = sshll.u32 %s606_s15, 4  ;;  %s25_s18 = sshll.u32 %s607_s17, 4  ;;  %s86_s16 = int_to_ptr.vmem [resolvable:$true] %s85_s16  ;;  %s701_s18 = int_to_ptr.vmem [resolvable:$true] %s25_s18 }
  0x29   :  { %s484_s20 = scalar_lea.hbm %s909_s5, 1024 }
  0x2a   :  { %p485_p2 = scmp.ne.s32.totalorder %s909_s5, %s484_s20  ;;  %p488_p3 = scmp.lt.u32.totalorder %s484_s20, %s909_s5 }
  0x2c   :  { %p490_p4 = pnand %p488_p3, %p485_p2 }
  0x2e   :  { %493 = shalt.err (!%p490_p4)
}
  0x2f   :  { %s494_s3 = scalar_lea.vmem %s86_s16, 1024  ;;  %p499_p6 = scmp.lt.s32.totalorder %s86_s16, %s86_s16 }
  0x30   :  { %p495_p5 = scmp.ne.s32.totalorder %s86_s16, %s494_s3  ;;  %p500_p7 = scmp.lt.s32.totalorder %s494_s3, %s494_s3 }
  0x32   :  { %p501_p8 = por %p500_p7, %p499_p6 }
  0x34   :  { %p502_p9 = pnand %p501_p8, %p495_p5 }
  0x36   :  { %505 = shalt.err (!%p502_p9)
}
  0x37   :  { %91 = dma.hbm_to_vmem [thread:$0]  %s909_s5, 1024, %s86_s16, [#allocation12], %s604_s22, %s604_s22, %s605_s23  }
  0x38   :  { %s506_s30 = scalar_lea.hbm %s904_s0, 4096 }
  0x39   :  { %p507_p10 = scmp.ne.s32.totalorder %s904_s0, %s506_s30  ;;  %p510_p11 = scmp.lt.u32.totalorder %s506_s30, %s904_s0 }
  0x3b   :  { %p512_p12 = pnand %p510_p11, %p507_p10 }
  0x3d   :  { %515 = shalt.err (!%p512_p12)
}
  0x3e   :  { %s516_s12 = scalar_lea.vmem %s701_s18, 4096  ;;  %p521_p0 = scmp.lt.s32.totalorder %s701_s18, %s701_s18 }
  0x3f   :  { %p517_p13 = scmp.ne.s32.totalorder %s701_s18, %s516_s12  ;;  %p522_p1 = scmp.lt.s32.totalorder %s516_s12, %s516_s12 }
  0x41   :  { %p523_p2 = por %p522_p1, %p521_p0 }
  0x43   :  { %p524_p3 = pnand %p523_p2, %p517_p13 }
  0x45   :  { %527 = shalt.err (!%p524_p3)
}
  0x46   :  { %31 = dma.hbm_to_vmem [thread:$0]  %s904_s0, 4096, %s701_s18, [#allocation4], %s604_s22, %s604_s22, %s605_s23  }
  0x47   :  { %s608_s16 = smov [#allocation7]   ;;  %s609_s19 = smov [#allocation10]  }
  0x48   :  { %s49_s17 = sshll.u32 %s608_s16, 4  ;;  %s73_s8 = sshll.u32 %s609_s19, 4  ;;  %s50_s17 = int_to_ptr.vmem [resolvable:$true] %s49_s17  ;;  %s738_s8 = int_to_ptr.vmem [resolvable:$true] %s73_s8 }
  0x49   :  { %s528_s24 = scalar_lea.hbm %s906_s2, 1024 }
  0x4a   :  { %p529_p4 = scmp.ne.s32.totalorder %s906_s2, %s528_s24  ;;  %p532_p5 = scmp.lt.u32.totalorder %s528_s24, %s906_s2 }
  0x4c   :  { %p534_p6 = pnand %p532_p5, %p529_p4 }
  0x4e   :  { %537 = shalt.err (!%p534_p6)
}
  0x4f   :  { %s538_s0 = scalar_lea.vmem %s50_s17, 1024  ;;  %p543_p8 = scmp.lt.s32.totalorder %s50_s17, %s50_s17 }
  0x50   :  { %p539_p7 = scmp.ne.s32.totalorder %s50_s17, %s538_s0  ;;  %p544_p9 = scmp.lt.s32.totalorder %s538_s0, %s538_s0 }
  0x52   :  { %p545_p10 = por %p544_p9, %p543_p8 }
  0x54   :  { %p546_p11 = pnand %p545_p10, %p539_p7 }
  0x56   :  { %549 = shalt.err (!%p546_p11)
}
  0x57   :  { %55 = dma.hbm_to_vmem [thread:$0]  %s906_s2, 1024, %s50_s17, [#allocation6], %s604_s22, %s604_s22, %s605_s23  }
  0x58   :  { %s550_s30 = scalar_lea.hbm %s908_s4, 2048 }
  0x59   :  { %p551_p12 = scmp.ne.s32.totalorder %s908_s4, %s550_s30  ;;  %p554_p13 = scmp.lt.u32.totalorder %s550_s30, %s908_s4 }
  0x5b   :  { %p556_p0 = pnand %p554_p13, %p551_p12 }
  0x5d   :  { %559 = shalt.err (!%p556_p0)
}
  0x5e   :  { %s560_s12 = scalar_lea.vmem %s738_s8, 2048  ;;  %p565_p2 = scmp.lt.s32.totalorder %s738_s8, %s738_s8 }
  0x5f   :  { %p561_p1 = scmp.ne.s32.totalorder %s738_s8, %s560_s12  ;;  %p566_p3 = scmp.lt.s32.totalorder %s560_s12, %s560_s12 }
  0x61   :  { %p567_p4 = por %p566_p3, %p565_p2 }
  0x63   :  { %p568_p5 = pnand %p567_p4, %p561_p1 }
  0x65   :  { %571 = shalt.err (!%p568_p5)
}
  0x66   :  { %79 = dma.hbm_to_vmem [thread:$0]  %s908_s4, 2048, %s738_s8, [#allocation9], %s604_s22, %s604_s22, %s605_s23  }
  0x67   :  { %s610_s15 = smov [#allocation13]   ;;  %s572_s20 = scalar_lea.hbm %s910_s6, 512 }
  0x68   :  { %s97_s16 = sshll.u32 %s610_s15, 4  ;;  %p573_p6 = scmp.ne.s32.totalorder %s910_s6, %s572_s20  ;;  %s98_s16 = int_to_ptr.vmem [resolvable:$true] %s97_s16 }
  0x69   :  { %p576_p7 = scmp.lt.u32.totalorder %s572_s20, %s910_s6 }
  0x6b   :  { %p578_p8 = pnand %p576_p7, %p573_p6 }
  0x6d   :  { %581 = shalt.err (!%p578_p8)
}
  0x6e   :  { %s582_s3 = scalar_lea.vmem %s98_s16, 512  ;;  %p587_p10 = scmp.lt.s32.totalorder %s98_s16, %s98_s16 }
  0x6f   :  { %p583_p9 = scmp.ne.s32.totalorder %s98_s16, %s582_s3  ;;  %p588_p11 = scmp.lt.s32.totalorder %s582_s3, %s582_s3 }
  0x71   :  { %p589_p12 = por %p588_p11, %p587_p10 }
  0x73   :  { %p590_p13 = pnand %p589_p12, %p583_p9 }
  0x75   :  { %593 = shalt.err (!%p590_p13)
}
  0x76   :  { %103 = dma.hbm_to_vmem [thread:$0]  %s910_s6, 512, %s98_s16, [#allocation12], %s604_s22, %s604_s22, %s605_s23  }
  0x77   :  { %594 = dma.done.wait [#allocation4], 4096  }
  0x78   :  { %595 = vsyncadd [#allocation4], 4294963200 }
  0x79   :  { %596 = dma.done.wait [#allocation6], 3072  }
  0x7a   :  { %597 = vsyncadd [#allocation6], 4294964224 }
  0x7b   :  { %598 = dma.done.wait [#allocation9], 2560  }
  0x7c   :  { %599 = vsyncadd [#allocation9], 4294964736 }
  0x7d   :  { %600 = dma.done.wait [#allocation12], 1536  }
  0x7e   :  { %601 = vsyncadd [#allocation12], 4294965760  ;;  %v129_v1 = vld [vmem:[#allocation3] sm:$0xff]  ;;  %v130_v2 = vld [vmem:[#allocation3 + $0x8] sm:$0xff]  ;;  %vm253_vm0 = vcmask 1041409   ;;  %vm256_vm1 = vcmask 1041408  }
  0x7f   :  { %v131_v3 = vld [vmem:[#allocation3 + $0x10] sm:$0xff]  ;;  %v132_v4 = vld [vmem:[#allocation3 + $0x18] sm:$0xff]  ;;  %v145_v5 = vld [vmem:[#allocation3 + $0x80] sm:$0xff]  ;;  %vm420_vm2 = vcmask 1024  }
  0x80   :  { %v133_v6 = vld [vmem:[#allocation3 + $0x20] sm:$0xff]  ;;  %v134_v7 = vld [vmem:[#allocation3 + $0x28] sm:$0xff]  ;;  %v135_v8 = vld [vmem:[#allocation3 + $0x30] sm:$0xff] }
  0x81   :  { %v146_v9 = vld [vmem:[#allocation3 + $0x88] sm:$0xff]  ;;  %v147_v10 = vld [vmem:[#allocation3 + $0x90] sm:$0xff]  ;;  %v161_v11 = vld [vmem:[#allocation10] sm:$0xff] }
  0x82   :  { %v136_v12 = vld [vmem:[#allocation3 + $0x38] sm:$0xff]  ;;  %v137_v13 = vld [vmem:[#allocation3 + $0x40] sm:$0xff]  ;;  %v138_v14 = vld [vmem:[#allocation3 + $0x48] sm:$0xff]  ;;  %v177_v33 = vmul.f32 %v161_v11, %v129_v1  ;;  %v193_v34 = vmul.f32 %v161_v11, %v145_v5 }
  0x83   :  { %v148_v15 = vld [vmem:[#allocation3 + $0x98] sm:$0xff]  ;;  %v162_v16 = vld [vmem:[#allocation10 + $0x8] sm:$0xff]  ;;  %v163_v17 = vld [vmem:[#allocation10 + $0x10] sm:$0xff] }
  0x84   :  { %v164_v18 = vld [vmem:[#allocation10 + $0x18] sm:$0xff]  ;;  %v139_v19 = vld [vmem:[#allocation3 + $0x50] sm:$0xff]  ;;  %v141_v21 = vld [vmem:[#allocation3 + $0x60] sm:$0xff]  ;;  %v178_v40 = vmul.f32 %v162_v16, %v130_v2  ;;  %v179_v41 = vmul.f32 %v163_v17, %v131_v3  ;;  %v194_v43 = vmul.f32 %v162_v16, %v146_v9  ;;  %v195_v50 = vmul.f32 %v163_v17, %v147_v10 }
  0x85   :  { %v140_v20 = vld [vmem:[#allocation3 + $0x58] sm:$0xff]  ;;  %v149_v22 = vld [vmem:[#allocation3 + $0xa0] sm:$0xff]  ;;  %v166_v24 = vld [vmem:[#allocation10 + $0x28] sm:$0xff]  ;;  %v180_v42 = vmul.f32 %v164_v18, %v132_v4  ;;  %v196_v55 = vmul.f32 %v164_v18, %v148_v15 }
  0x86   :  { %v165_v23 = vld [vmem:[#allocation10 + $0x20] sm:$0xff]  ;;  %v167_v25 = vld [vmem:[#allocation10 + $0x30] sm:$0xff]  ;;  %v142_v26 = vld [vmem:[#allocation3 + $0x68] sm:$0xff]  ;;  %v804_v48 = vmul.f32 %v166_v24, %v134_v7  ;;  %v209_v11 = vadd.f32 %v178_v40, %v177_v33 }
  0x87   :  { %v143_v27 = vld [vmem:[#allocation3 + $0x70] sm:$0xff]  ;;  %v144_v28 = vld [vmem:[#allocation3 + $0x78] sm:$0xff]  ;;  %v150_v29 = vld [vmem:[#allocation3 + $0xa8] sm:$0xff]  ;;  %v802_v47 = vmul.f32 %v165_v23, %v133_v6  ;;  %v806_v49 = vmul.f32 %v167_v25, %v135_v8  ;;  %v197_v62 = vmul.f32 %v165_v23, %v149_v22 }
  0x88   :  { %v168_v30 = vld [vmem:[#allocation10 + $0x38] sm:$0xff]  ;;  %v169_v31 = vld [vmem:[#allocation10 + $0x40] sm:$0xff]  ;;  %v170_v32 = vld [vmem:[#allocation10 + $0x48] sm:$0xff]  ;;  %v198_v5 = vmul.f32 %v166_v24, %v150_v29  ;;  %v210_v24 = vadd.f32 %v209_v11, %v179_v41 }
  0x89   :  { %v151_v35 = vld [vmem:[#allocation3 + $0xb0] sm:$0xff]  ;;  %v152_v36 = vld [vmem:[#allocation3 + $0xb8] sm:$0xff]  ;;  %v794_v39 = vld [vmem:[#allocation10 + $0x60] sm:$0xff]  ;;  %v808_v52 = vmul.f32 %v168_v30, %v136_v12  ;;  %v810_v53 = vmul.f32 %v169_v31, %v137_v13  ;;  %v812_v54 = vmul.f32 %v170_v32, %v138_v14  ;;  %v230_v12 = vadd.f32 %v194_v43, %v193_v34 }
  0x8a   :  { %v790_v37 = vld [vmem:[#allocation10 + $0x50] sm:$0xff]  ;;  %v792_v38 = vld [vmem:[#allocation10 + $0x58] sm:$0xff]  ;;  %v796_v44 = vld [vmem:[#allocation10 + $0x68] sm:$0xff]  ;;  %v821_v61 = vmul.f32 %v794_v39, %v141_v21  ;;  %v832_v9 = vmul.f32 %v167_v25, %v151_v35  ;;  %v834_v10 = vmul.f32 %v168_v30, %v152_v36  ;;  %v211_v36 = vadd.f32 %v210_v24, %v180_v42 }
  0x8b   :  { %v798_v45 = vld [vmem:[#allocation10 + $0x70] sm:$0xff]  ;;  %v800_v46 = vld [vmem:[#allocation10 + $0x78] sm:$0xff]  ;;  %v153_v51 = vld [vmem:[#allocation3 + $0xc0] sm:$0xff]  ;;  %v815_v59 = vmul.f32 %v790_v37, %v139_v19  ;;  %v818_v60 = vmul.f32 %v792_v38, %v140_v20  ;;  %v824_v2 = vmul.f32 %v796_v44, %v142_v26  ;;  %v231_v26 = vadd.f32 %v230_v12, %v195_v50 }
  0x8c   :  { %v334_v56 = vld [vmem:[#allocation7] sm:$0xff]  ;;  %v335_v57 = vld [vmem:[#allocation7 + $0x8] sm:$0xff]  ;;  %v336_v63 = vld [vmem:[#allocation7 + $0x10] sm:$0xff]  ;;  %v827_v3 = vmul.f32 %v798_v45, %v143_v27  ;;  %v830_v4 = vmul.f32 %v800_v46, %v144_v28  ;;  %v836_v16 = vmul.f32 %v169_v31, %v153_v51 }
  0x8d   :  { %v154_v58 = vld [vmem:[#allocation3 + $0xc8] sm:$0xff]  ;;  %v337_v0 = vld [vmem:[#allocation7 + $0x18] sm:$0xff]  ;;  %v338_v1 = vld [vmem:[#allocation7 + $0x20] sm:$0xff]  ;;  %v232_v40 = vadd.f32 %v231_v26, %v196_v55  ;;  %v212_v55 = vadd.f32 %v211_v36, %v802_v47 }
  0x8e   :  { %v339_v6 = vld [vmem:[#allocation7 + $0x28] sm:$0xff]  ;;  %v340_v7 = vld [vmem:[#allocation7 + $0x30] sm:$0xff]  ;;  %v342_v8 = vld [vmem:[#allocation13] sm:$0xff]  ;;  %v838_v30 = vmul.f32 %v170_v32, %v154_v58 }
  0x8f   :  { %v343_v13 = vld [vmem:[#allocation13 + $0x8] sm:$0xff]  ;;  %v344_v14 = vld [vmem:[#allocation13 + $0x10] sm:$0xff]  ;;  %v345_v15 = vld [vmem:[#allocation13 + $0x18] sm:$0xff]  ;;  %v346_v18 = vmul.f32 %v342_v8, %v334_v56  ;;  %v350_v25 = vmul.f32 %v342_v8, %v338_v1 }
  0x90   :  { %v341_v17 = vld [vmem:[#allocation7 + $0x38] sm:$0xff]  ;;  %v347_v19 = vmul.f32 %v343_v13, %v335_v57  ;;  %v348_v20 = vmul.f32 %v344_v14, %v336_v63  ;;  %v155_v21 = vld [vmem:[#allocation3 + $0xd0] sm:$0xff]  ;;  %v157_v23 = vld [vmem:[#allocation3 + $0xe0] sm:$0xff]  ;;  %v351_v27 = vmul.f32 %v343_v13, %v339_v6  ;;  %v349_v33 = vmul.f32 %v345_v15, %v337_v0 }
  0x91   :  { %v156_v22 = vld [vmem:[#allocation3 + $0xd8] sm:$0xff]  ;;  %v158_v28 = vld [vmem:[#allocation3 + $0xe8] sm:$0xff]  ;;  %v159_v29 = vld [vmem:[#allocation3 + $0xf0] sm:$0xff]  ;;  %v352_v34 = vmul.f32 %v344_v14, %v340_v7  ;;  %v353_v43 = vmul.f32 %v345_v15, %v341_v17  ;;  %v841_v41 = vmul.f32 %v790_v37, %v155_v21  ;;  %v847_v32 = vmul.f32 %v794_v39, %v157_v23 }
  0x92   :  { %v354_v35 = vadd.f32 %v347_v19, %v346_v18  ;;  %v260_v31 = vld [vmem:[#allocation5] sm:$0xff]  ;;  %v363_v51 = vadd.f32 %v351_v27, %v350_v25  ;;  %v261_v56 = vld [vmem:[#allocation5 + $0x8] sm:$0xff]  ;;  %v262_v57 = vld [vmem:[#allocation5 + $0x10] sm:$0xff]  ;;  %v844_v50 = vmul.f32 %v792_v38, %v156_v22  ;;  %v850_v42 = vmul.f32 %v796_v44, %v158_v28 }
  0x93   :  { %v263_v63 = vld [vmem:[#allocation5 + $0x18] sm:$0xff]  ;;  %v264_v0 = vld [vmem:[#allocation5 + $0x20] sm:$0xff]  ;;  %v265_v1 = vld [vmem:[#allocation5 + $0x28] sm:$0xff]  ;;  %v233_v7 = vadd.f32 %v232_v40, %v197_v62  ;;  %v854_v14 = vmul.f32 %v798_v45, %v159_v29  ;;  %v213_v44 = vadd.f32 %v212_v55, %v804_v48 }
  0x94   :  { %v355_v58 = vadd.f32 %v354_v35, %v348_v20  ;;  %v268_v6 = vld [vmem:[#allocation5 + $0x40] sm:$0xff]  ;;  %v364_v8 = vadd.f32 %v363_v51, %v352_v34  ;;  %v266_v11 = vld [vmem:[#allocation5 + $0x30] sm:$0xff]  ;;  %v267_v37 = vld [vmem:[#allocation5 + $0x38] sm:$0xff] }
  0x95   :  { %v269_v12 = vld [vmem:[#allocation5 + $0x48] sm:$0xff]  ;;  %v276_v13 = vld [vmem:[#allocation11] sm:$0xff]  ;;  %v278_v15 = vld [vmem:[#allocation11 + $0x10] sm:$0xff]  ;;  %v234_v21 = vadd.f32 %v233_v7, %v198_v5  ;;  %v214_v29 = vadd.f32 %v213_v44, %v806_v49 }
  0x96   :  { %v277_v38 = vld [vmem:[#allocation11 + $0x8] sm:$0xff]  ;;  %v356_v39 = vadd.f32 %v355_v58, %v349_v33  ;;  %v279_v17 = vld [vmem:[#allocation11 + $0x18] sm:$0xff]  ;;  %v280_v18 = vld [vmem:[#allocation11 + $0x20] sm:$0xff]  ;;  %v284_v19 = vmul.f32 %v276_v13, %v260_v31  ;;  %v365_v47 = vadd.f32 %v364_v8, %v353_v43  ;;  %v292_v24 = vmul.f32 %v276_v13, %v268_v6 }
  0x97   :  { %v285_v20 = vmul.f32 %v277_v38, %v261_v56  ;;  %v281_v62 = vld [vmem:[#allocation11 + $0x28] sm:$0xff]  ;;  %v282_v22 = vld [vmem:[#allocation11 + $0x30] sm:$0xff]  ;;  %v857_v23 = vld [vmem:[#allocation11 + $0x38] sm:$0xff]  ;;  %v286_v27 = vmul.f32 %v278_v15, %v262_v57  ;;  %v287_v45 = vmul.f32 %v279_v17, %v263_v63  ;;  %v288_v28 = vmul.f32 %v280_v18, %v264_v0 }
  0x98   :  { %v357_v26 = vrot.slane %v356_v39, 4  ;;  %v270_v25 = vld [vmem:[#allocation5 + $0x50] sm:$0xff]  ;;  %v235_v33 = vadd.f32 %v234_v21, %v832_v9  ;;  %v366_v34 = vrot.slane %v365_v47, 4  ;;  %v271_v35 = vld [vmem:[#allocation5 + $0x58] sm:$0xff]  ;;  %v272_v31 = vld [vmem:[#allocation5 + $0x60] sm:$0xff]  ;;  %v289_v5 = vmul.f32 %v281_v62, %v265_v1 }
  0x99   :  { %v273_v48 = vld [vmem:[#allocation5 + $0x68] sm:$0xff]  ;;  %v274_v40 = vld [vmem:[#allocation5 + $0x70] sm:$0xff]  ;;  %v861_v43 = vmul.f32 %v282_v22, %v266_v11  ;;  %v864_v51 = vmul.f32 %v857_v23, %v267_v37  ;;  %v293_v56 = vmul.f32 %v277_v38, %v269_v12  ;;  %v215_v57 = vadd.f32 %v214_v29, %v808_v52  ;;  %v380_v9 = vld [vmem:[#allocation8] sm:$0xff] }
  0x9a   :  { %v358_v36 = vadd.f32 %v357_v26, %v356_v39  ;;  %v236_v63 = vadd.f32 %v235_v33, %v834_v10  ;;  %v367_v49 = vadd.f32 %v366_v34, %v365_v47  ;;  %v294_v58 = vmul.f32 %v278_v15, %v270_v25  ;;  %v384_v0 = vld [vmem:[%s911_s7] sm:$0xff]  ;;  %v381_v8 = vld [vmem:[#allocation8 + $0x8] sm:$0xff]  ;;  %v382_v13 = vld [vmem:[#allocation8 + $0x10] sm:$0xff] }
  0x9b   :  { %v295_v6 = vmul.f32 %v279_v17, %v271_v35  ;;  %v296_v55 = vmul.f32 %v280_v18, %v272_v31  ;;  %v297_v7 = vmul.f32 %v281_v62, %v273_v48  ;;  %v385_v11 = vld [vmem:[%s911_s7 + $0x8] sm:$0xff]  ;;  %v216_v52 = vadd.f32 %v215_v57, %v810_v53  ;;  %v383_v44 = vld [vmem:[#allocation8 + $0x18] sm:$0xff] }
  0x9c   :  { %v359_v1 = vrot.slane %v358_v36, 2  ;;  %v237_v10 = vadd.f32 %v236_v63, %v836_v16  ;;  %v368_v37 = vrot.slane %v367_v49, 2  ;;  %v298_v12 = vmul.f32 %v282_v22, %v274_v40  ;;  %v275_v34 = vld [vmem:[#allocation5 + $0x78] sm:$0xff] }
  0x9d   :  { %v300_v39 = vadd.f32 %v285_v20, %v284_v19  ;;  %v313_v15 = vadd.f32 %v293_v56, %v292_v24  ;;  %v386_v17 = vmul.f32 %v384_v0, %v380_v9  ;;  %v217_v18 = vadd.f32 %v216_v52, %v812_v54 }
  0x9e   :  { %v360_v38 = vadd.f32 %v359_v1, %v358_v36  ;;  %v238_v21 = vadd.f32 %v237_v10, %v838_v30  ;;  %v369_v47 = vadd.f32 %v368_v37, %v367_v49  ;;  %v387_v62 = vmul.f32 %v385_v11, %v381_v8 }
  0x9f   :  { %v301_v25 = vadd.f32 %v300_v39, %v286_v27  ;;  %v314_v53 = vadd.f32 %v313_v15, %v294_v58  ;;  %v388_v29 = vmul.f32 %v384_v0, %v382_v13  ;;  %v218_v16 = vadd.f32 %v217_v18, %v815_v59  ;;  %v160_v27 = vld [vmem:[#allocation3 + $0xf8] sm:$0xff] }
  0xa0   :  { %v361_v26 = vrot.slane %v360_v38, 1  ;;  %v239_v22 = vadd.f32 %v238_v21, %v841_v41  ;;  %v370_v33 = vrot.slane %v369_v47, 1  ;;  %v389_v19 = vmul.f32 %v385_v11, %v383_v44 }
  0xa1   :  { %v302_v24 = vadd.f32 %v301_v25, %v287_v45  ;;  %v315_v35 = vadd.f32 %v314_v53, %v295_v6  ;;  %v390_v31 = vadd.f32 %v387_v62, %v386_v17  ;;  %v219_v54 = vadd.f32 %v218_v16, %v818_v60 }
  0xa2   :  { %v362_v20 = vadd.f32 %v361_v26, %v360_v38  ;;  %v240_v30 = vadd.f32 %v239_v22, %v844_v50  ;;  %v371_v48 = vadd.f32 %v370_v33, %v369_v47  ;;  %v397_v36 = vadd.f32 %v389_v19, %v388_v29 }
  0xa3   :  { %v299_v40 = vmul.f32 %v857_v23, %v275_v34  ;;  %v303_v56 = vadd.f32 %v302_v24, %v288_v28  ;;  %v316_v59 = vadd.f32 %v315_v35, %v296_v55  ;;  %v391_v57 = vrot.slane %v390_v31, 4 }
  0xa4   :  { %v220_v41 = vadd.f32 %v219_v54, %v821_v61  ;;  %v241_v63 = vadd.f32 %v240_v30, %v847_v32  ;;  %v374_v45 = vsel %vm253_vm0, %v371_v48, %v362_v20  ;;  %v398_v49 = vrot.slane %v397_v36, 4 }
  0xa5   :  { %v376_v58 = vsel %vm256_vm1, %v374_v45, 0.0  ;;  %v304_v60 = vadd.f32 %v303_v56, %v289_v5  ;;  %v317_v9 = vadd.f32 %v316_v59, %v297_v7  ;;  %v392_v50 = vadd.f32 %v391_v57, %v390_v31 }
  0xa6   :  { %v208_v0 = vmul.f32 %v800_v46, %v160_v27  ;;  %v221_v1 = vadd.f32 %v220_v41, %v824_v2  ;;  %v242_v23 = vadd.f32 %v241_v63, %v850_v42  ;;  %377 = vadd.xlane.f32.xlu1 %v376_v58  ;;  %v399_v28 = vadd.f32 %v398_v49, %v397_v36  ;;  %v430_v41 = vld [vmem:[#allocation2] ss:$0 sm:$0xff] }
  0xa7   :  { %v305_v61 = vadd.f32 %v304_v60, %v861_v43  ;;  %v318_v6 = vadd.f32 %v317_v9, %v298_v12  ;;  %v393_v32 = vrot.slane %v392_v50, 2 }
  0xa8   :  { %v222_v55 = vadd.f32 %v221_v1, %v827_v3  ;;  %v243_v8 = vadd.f32 %v242_v23, %v854_v14  ;;  %v400_v11 = vrot.slane %v399_v28, 2 }
  0xa9   :  { %v306_v5 = vadd.f32 %v305_v61, %v864_v51  ;;  %v319_v7 = vadd.f32 %v318_v6, %v299_v40  ;;  %v394_v52 = vadd.f32 %v393_v32, %v392_v50 }
  0xaa   :  { %v223_v46 = vadd.f32 %v222_v55, %v830_v4  ;;  %v244_v2 = vadd.f32 %v243_v8, %v208_v0  ;;  %v401_v10 = vadd.f32 %v400_v11, %v399_v28 }
  0xab   :  { %v307_v42 = vrot.slane %v306_v5, 4  ;;  %v320_v37 = vrot.slane %v319_v7, 4  ;;  %v395_v13 = vrot.slane %v394_v52, 1 }
  0xac   :  { %v224_v38 = vrot.slane %v223_v46, 4  ;;  %v245_v43 = vrot.slane %v244_v2, 4  ;;  %v402_v12 = vrot.slane %v401_v10, 1 }
  0xad   :  { %v308_v39 = vadd.f32 %v307_v42, %v306_v5  ;;  %v321_v15 = vadd.f32 %v320_v37, %v319_v7  ;;  %v396_v3 = vadd.f32 %v395_v13, %v394_v52 }
  0xae   :  { %v225_v44 = vadd.f32 %v224_v38, %v223_v46  ;;  %v246_v14 = vadd.f32 %v245_v43, %v244_v2  ;;  %v403_v17 = vadd.f32 %v402_v12, %v401_v10 }
  0xaf   :  { %v309_v18 = vrot.slane %v308_v39, 2  ;;  %v322_v51 = vrot.slane %v321_v15, 2 }
  0xb0   :  { %v226_v21 = vrot.slane %v225_v44, 2  ;;  %v247_v47 = vrot.slane %v246_v14, 2  ;;  %v406_v4 = vsel %vm253_vm0, %v403_v17, %v396_v3 }
  0xb1   :  { %v310_v62 = vadd.f32 %v309_v18, %v308_v39  ;;  %v323_v26 = vadd.f32 %v322_v51, %v321_v15  ;;  %v408_v25 = vsel %vm256_vm1, %v406_v4, 0.0 }
  0xb2   :  { %v227_v53 = vadd.f32 %v226_v21, %v225_v44  ;;  %v248_v29 = vadd.f32 %v247_v47, %v246_v14  ;;  %409 = vadd.xlane.f32.xlu1 %v408_v25 }
  0xb3   :  { %v311_v16 = vrot.slane %v310_v62, 1  ;;  %v324_v22 = vrot.slane %v323_v26, 1 }
  0xb4   :  { %v228_v33 = vrot.slane %v227_v53, 1  ;;  %v249_v34 = vrot.slane %v248_v29, 1 }
  0xb5   :  { %v312_v19 = vadd.f32 %v311_v16, %v310_v62  ;;  %v325_v20 = vadd.f32 %v324_v22, %v323_v26 }
  0xb6   :  { %v229_v24 = vadd.f32 %v228_v33, %v227_v53  ;;  %v250_v35 = vadd.f32 %v249_v34, %v248_v29 }
  0xb7   :  { %v328_v54 = vsel %vm253_vm0, %v325_v20, %v312_v19 }
  0xb8   :  { %v254_v31 = vsel %vm253_vm0, %v250_v35, %v229_v24  ;;  %v330_v48 = vsel %vm256_vm1, %v328_v54, 0.0 }
  0xb9   :  { %v257_v30 = vsel %vm256_vm1, %v254_v31, 0.0 }
  0xba   :  { %258 = vadd.xlane.f32.xlu0 %v257_v30 }
  0xbe   :  { %331 = vadd.xlane.f32.xlu0 %v330_v48 }
 0x133   :  { %v378_v27 = vpop.xlane.xlu1 %377 }
 0x13f   :  { %v410_v59 = vpop.xlane.xlu1 %409 }
 0x147   :  { %v259_v36 = vpop.xlane.xlu0 %258 }
 0x14b   :  { %v332_v40 = vpop.xlane.xlu0 %331 }
 0x14c   :  { %v333_v56 = vadd.f32 %v332_v40, %v259_v36 }
 0x14e   :  { %v379_v57 = vadd.f32 %v378_v27, %v333_v56 }
 0x150   :  { %v411_v63 = vadd.f32 %v410_v59, %v379_v57 }
 0x152   :  { %v419_v45 = vadd.f32 %v430_v41, %v411_v63 }
 0x154   :  { %421 = vst.msk [vmem:[%s913_s9] sm:$0x3] %vm420_vm2, %v419_v45 }
 0x155   :  { %426 = vsyncpa [#allocation4], 1 }
 0x156   :  { %427 = vsyncpa [#allocation6], 1 }
 0x157   :  { %428 = vsyncpa [#allocation9], 1 }
 0x158   :  { %429 = vsyncpa [#allocation12], 1 }

</bundles_post_ra>
